<compile_context>
chip_gen: v7x
topology: tpu7x:2x2x1
jax: 0.10.0
libtpu: 0.0.40
codegen_flags: <defaults>
</compile_context>

<pallas_src>
import functools

import jax
import jax.numpy as jnp
from jax.experimental import pallas as pl
from jax.experimental.pallas import tpu as pltpu

_LANE = 128
_SUBLANE = 8


def _round_up(n, m):
    return -(-n // m) * m


def dueling_mlp_kernel(x_ref, w1_ref, bias_ref, wh_ref, q_ref, *, hidden):
    # Hidden layer: [TB, S] @ [S, H] (MXU, f32 accumulate) + b1, relu in f32.
    h = jnp.dot(x_ref[...], w1_ref[...], preferred_element_type=jnp.float32)
    h = jnp.maximum(h + bias_ref[:, :hidden], 0.0)
    # Fused dueling head: [TB, H] @ [H, A] + b_head.  Cast h to the head-weight
    # dtype so the bf16 path keeps the MXU bf16-native on both matmuls.
    q = jnp.dot(h.astype(wh_ref.dtype), wh_ref[...],
                preferred_element_type=jnp.float32)
    q_ref[...] = (q + bias_ref[:, hidden:]).astype(q_ref.dtype)


def _default_batch_tile(B):
    """Largest comfortable batch tile, with >= 2 grid steps when possible.

    TB_MAX=4096 keeps the per-step footprint (~13 MiB in f32, lane padding
    included) well inside v7x's 64 MiB VMEM / 32 MiB scoped default; splitting
    into >= 2 steps lets dimension_semantics=("parallel",) use both v7x TCs.
    """
    TB_MAX = 4096
    if B <= _SUBLANE:
        return B  # cannot split below sublane granularity
    return min(TB_MAX, _round_up(-(-B // 2), _SUBLANE))


def _vmem_budget_bytes(tb, S, H, A, in_bytes):
    """Lane-padding-aware VMEM footprint of one pipelined step (+ headroom)."""
    x_buf = tb * _round_up(S, _LANE) * in_bytes          # (tb, S) lane-padded
    q_buf = tb * _round_up(A, _LANE) * 4                 # (tb, A) lane-padded
    h_buf = tb * _round_up(H, _LANE) * 4                 # f32 intermediate
    w_res = (_round_up(S, _SUBLANE) * _round_up(H, _LANE) * in_bytes
             + _round_up(H, _SUBLANE) * _round_up(A, _LANE) * in_bytes
             + _SUBLANE * _round_up(H + A, _LANE) * 4)   # packed biases
    total = 2 * (x_buf + q_buf) + h_buf + 2 * w_res      # double-buffered I/O
    return int(min(total + (8 << 20), 56 << 20))         # headroom, < v7x 64MiB


def dueling_mlp_forward(x, w1, b1, wv, bv, wa, ba, *, tb=None, use_bf16=False):
    """DuelingMLP forward.

    x: [B, S]; w1: [S, H]; b1: [1, H]; wv: [H, 1]; bv: [1, 1];
    wa: [H, A]; ba: [1, A].  Returns q: [B, A] (float32).
    """
    B, S = x.shape
    H = w1.shape[1]
    A = wa.shape[1]

    # --- one-time algebraic fold of the dueling aggregation into the head ---
    # q = v + adv - mean_a(adv) = h @ (Wv + Wa - rowmean(Wa)) + (bv + ba - mean(ba))
    # (exact algebra; f32 summation order differs slightly from the reference)
    w_head = wv + (wa - jnp.mean(wa, axis=1, keepdims=True))   # [H, A]
    b_head = bv + (ba - jnp.mean(ba, axis=1, keepdims=True))   # [1, A]
    bias = jnp.concatenate([b1, b_head], axis=1).astype(jnp.float32)  # [1,H+A]

    if use_bf16:
        # Numerics-changing: bf16 MXU operands, f32 accumulation & bias/relu.
        x = x.astype(jnp.bfloat16)
        w1 = w1.astype(jnp.bfloat16)
        w_head = w_head.astype(jnp.bfloat16)
    in_bytes = jnp.dtype(x.dtype).itemsize

    if tb is None:
        tb = _default_batch_tile(B)
    grid = (pl.cdiv(B, tb),)

    cost = pl.CostEstimate(
        flops=2 * B * (S * H + H * A),
        transcendentals=0,
        bytes_accessed=(B * S * in_bytes + B * A * 4
                        + (S * H + H * A) * in_bytes + (H + A) * 4),
    )

    kernel = functools.partial(dueling_mlp_kernel, hidden=H)
    return pl.pallas_call(
        kernel,
        out_shape=jax.ShapeDtypeStruct((B, A), jnp.float32),
        grid=grid,
        in_specs=[
            pl.BlockSpec((tb, S), lambda i: (i, 0)),        # x tile (pipelined)
            pl.BlockSpec((S, H), lambda i: (0, 0)),         # W1 (VMEM-resident)
            pl.BlockSpec((1, H + A), lambda i: (0, 0)),     # packed biases
            pl.BlockSpec((H, A), lambda i: (0, 0)),         # fused head weight
        ],
        out_specs=pl.BlockSpec((tb, A), lambda i: (i, 0)),
        compiler_params=pltpu.CompilerParams(
            dimension_semantics=("parallel",),
            vmem_limit_bytes=_vmem_budget_bytes(tb, S, H, A, in_bytes)),
        cost_estimate=cost,
    )(x, w1, bias, w_head)


def reference_forward(x, w1, b1, wv, bv, wa, ba):
    h = jax.nn.relu(x @ w1 + b1)
    v = h @ wv + bv
    adv = h @ wa + ba
    return v + adv - jnp.mean(adv, axis=1, keepdims=True)


if __name__ == "__main__":
    # Module hyperparameters (synthetic, deterministic).
    state_size = 16
    n_actions = 4
    hidden = 256

    key = jax.random.PRNGKey(0)
    kx, k1, k2, k3, k4, k5, k6 = jax.random.split(key, 7)

    # Deterministic parameter init (weights stored as [in, out]).
    w1 = jax.random.normal(k1, (state_size, hidden), dtype=jnp.float32) * 0.1
    b1 = jax.random.normal(k2, (1, hidden), dtype=jnp.float32) * 0.1
    wv = jax.random.normal(k3, (hidden, 1), dtype=jnp.float32) * 0.1
    bv = jax.random.normal(k4, (1, 1), dtype=jnp.float32) * 0.1
    wa = jax.random.normal(k5, (hidden, n_actions), dtype=jnp.float32) * 0.1
    ba = jax.random.normal(k6, (1, n_actions), dtype=jnp.float32) * 0.1

    # 1) Small single-tile case (B = 8, one grid step).
    x_small = jax.random.normal(kx, (8, state_size), dtype=jnp.float32)
    q_small = jax.block_until_ready(
        dueling_mlp_forward(x_small, w1, b1, wv, bv, wa, ba))
    q_small_ref = reference_forward(x_small, w1, b1, wv, bv, wa, ba)
    assert q_small.shape == (8, n_actions)
    assert jnp.allclose(q_small, q_small_ref, atol=1e-4, rtol=1e-4)

    # 2) Default heuristic: B=48 -> tb=24, two grid steps (megacore path).
    x_mid = jax.random.normal(kx, (48, state_size), dtype=jnp.float32)
    q_mid = jax.block_until_ready(
        dueling_mlp_forward(x_mid, w1, b1, wv, bv, wa, ba))
    q_mid_ref = reference_forward(x_mid, w1, b1, wv, bv, wa, ba)
    assert q_mid.shape == (48, n_actions)
    assert jnp.allclose(q_mid, q_mid_ref, atol=1e-4, rtol=1e-4)

    # 3) Explicit tile with a partial final block (B=44, tb=16 -> 3 steps,
    #    last step writes back only 12 valid rows).
    x_big = jax.random.normal(kx, (44, state_size), dtype=jnp.float32)
    q_big = jax.block_until_ready(
        dueling_mlp_forward(x_big, w1, b1, wv, bv, wa, ba, tb=16))
    q_big_ref = reference_forward(x_big, w1, b1, wv, bv, wa, ba)
    assert q_big.shape == (44, n_actions)
    assert jnp.allclose(q_big, q_big_ref, atol=1e-4, rtol=1e-4)

    # 4) Optional bf16-MXU path (numerics-changing; loose tolerance).
    q_bf16 = jax.block_until_ready(
        dueling_mlp_forward(x_mid, w1, b1, wv, bv, wa, ba, use_bf16=True))
    assert q_bf16.shape == (48, n_actions)
    assert jnp.allclose(q_bf16, q_mid_ref, atol=1e-1, rtol=1e-1)

    print("KERNEL_OK")
</pallas_src>

<mosaic_0001>
module attributes {stable_mosaic.version = 11 : i64} {
  func.func @dueling_mlp_kernel(%arg0: i32, %arg1: memref<8x16xf32, #tpu.memory_space<vmem>>, %arg2: memref<16x256xf32, #tpu.memory_space<vmem>>, %arg3: memref<1x260xf32, #tpu.memory_space<vmem>>, %arg4: memref<256x4xf32, #tpu.memory_space<vmem>>, %arg5: memref<8x4xf32, #tpu.memory_space<vmem>>) attributes {dimension_semantics = [#tpu.dimension_semantics<parallel>], iteration_bounds = array<i64: 1>, scalar_prefetch = 0 : i64, scratch_operands = 0 : i64, tpu.core_type = #tpu.core_type<tc>, window_params = [{transform_indices = @transform_0, window_bounds = array<i64: 8, 16>}, {pipeline_mode = #tpu.pipeline_mode<synchronous>, transform_indices = @transform_1, window_bounds = array<i64: 16, 256>}, {pipeline_mode = #tpu.pipeline_mode<synchronous>, transform_indices = @transform_2, window_bounds = array<i64: 1, 260>}, {pipeline_mode = #tpu.pipeline_mode<synchronous>, transform_indices = @transform_3, window_bounds = array<i64: 256, 4>}, {transform_indices = @transform_4, window_bounds = array<i64: 8, 4>}]} {
    %c0 = arith.constant 0 : index
    %c0_0 = arith.constant 0 : index
    %0 = vector.load %arg1[%c0, %c0_0] : memref<8x16xf32, #tpu.memory_space<vmem>>, vector<8x16xf32>
    %c0_1 = arith.constant 0 : index
    %c0_2 = arith.constant 0 : index
    %1 = vector.load %arg2[%c0_1, %c0_2] : memref<16x256xf32, #tpu.memory_space<vmem>>, vector<16x256xf32>
    %cst = arith.constant dense<0.000000e+00> : vector<8x256xf32>
    %2 = tpu.matmul %0, %1, %cst {dimension_numbers = #tpu.dot_dimension_numbers<[1], [0], [0], [1], [0, 0, 1, 1], [], []>} : vector<8x16xf32>, vector<16x256xf32>, vector<8x256xf32> -> vector<8x256xf32>
    %c0_3 = arith.constant 0 : index
    %c0_4 = arith.constant 0 : index
    %3 = vector.load %arg3[%c0_3, %c0_4] : memref<1x260xf32, #tpu.memory_space<vmem>>, vector<1x256xf32>
    %4 = vector.broadcast %3 : vector<1x256xf32> to vector<8x256xf32>
    %5 = arith.addf %2, %4 : vector<8x256xf32>
    %cst_5 = arith.constant 0.000000e+00 : f32
    %6 = vector.broadcast %cst_5 : f32 to vector<8x256xf32>
    %7 = arith.maximumf %5, %6 : vector<8x256xf32>
    %c0_6 = arith.constant 0 : index
    %c0_7 = arith.constant 0 : index
    %8 = vector.load %arg4[%c0_6, %c0_7] : memref<256x4xf32, #tpu.memory_space<vmem>>, vector<256x4xf32>
    %cst_8 = arith.constant dense<0.000000e+00> : vector<8x4xf32>
    %9 = tpu.matmul %7, %8, %cst_8 {dimension_numbers = #tpu.dot_dimension_numbers<[1], [0], [0], [1], [0, 0, 1, 1], [], []>} : vector<8x256xf32>, vector<256x4xf32>, vector<8x4xf32> -> vector<8x4xf32>
    %c0_9 = arith.constant 0 : index
    %c256 = arith.constant 256 : index
    %10 = vector.load %arg3[%c0_9, %c256] : memref<1x260xf32, #tpu.memory_space<vmem>>, vector<1x4xf32>
    %11 = vector.broadcast %10 : vector<1x4xf32> to vector<8x4xf32>
    %12 = arith.addf %9, %11 : vector<8x4xf32>
    %c0_10 = arith.constant 0 : index
    %c0_11 = arith.constant 0 : index
    %13 = vector.load %arg5[%c0_10, %c0_11] : memref<8x4xf32, #tpu.memory_space<vmem>>, vector<8x4xf32>
    tpu.vector_store %arg5[%c0_10, %c0_11], %12 {strides = array<i32>} : memref<8x4xf32, #tpu.memory_space<vmem>>, vector<8x4xf32>,
    return
  }
  func.func @transform_0(%arg0: i32) -> (i32, i32) {
    %c0_i32 = arith.constant 0 : i32
    %c0_i32_0 = arith.constant 0 : i32
    return %arg0, %c0_i32 : i32, i32
  }
  func.func @transform_1(%arg0: i32) -> (i32, i32) {
    %c0_i32 = arith.constant 0 : i32
    %c0_i32_0 = arith.constant 0 : i32
    %c0_i32_1 = arith.constant 0 : i32
    return %c0_i32, %c0_i32_0 : i32, i32
  }
  func.func @transform_2(%arg0: i32) -> (i32, i32) {
    %c0_i32 = arith.constant 0 : i32
    %c0_i32_0 = arith.constant 0 : i32
    %c0_i32_1 = arith.constant 0 : i32
    return %c0_i32, %c0_i32_0 : i32, i32
  }
  func.func @transform_3(%arg0: i32) -> (i32, i32) {
    %c0_i32 = arith.constant 0 : i32
    %c0_i32_0 = arith.constant 0 : i32
    %c0_i32_1 = arith.constant 0 : i32
    return %c0_i32, %c0_i32_0 : i32, i32
  }
  func.func @transform_4(%arg0: i32) -> (i32, i32) {
    %c0_i32 = arith.constant 0 : i32
    %c0_i32_0 = arith.constant 0 : i32
    return %arg0, %c0_i32 : i32, i32
  }
}

</mosaic_0001>

<bundles_post_ra>
// kernel: tpu_custom_call.1
= control target key start
LH: loop header
LB: loop body
LE: loop exit
PB: predicated region body
PF: predicated region fallthrough
CT: control target
= control target key end

     0   :  { %v300_v3 = vmov 0.0   ;;  %vm34_vm0 = vcmask 130048   ;;  %v24_v56 = vlaneseq  ;;  %vm220_vm1 = vcmask 31744   ;;  %s446_s1 = inlined_call_operand.vmem [shape: f32[16,256], index: 1, kind: input, shape index: {}]   ;;  %s447_s0 = inlined_call_operand.vmem [shape: f32[8,16], index: 0, kind: input, shape index: {}]   ;;  %s448_s3 = inlined_call_operand.vmem [shape: f32[256,4], index: 3, kind: input, shape index: {}]   ;;  %s449_s2 = inlined_call_operand.vmem [shape: f32[1,260], index: 2, kind: input, shape index: {}]   ;;  %s450_s4 = inlined_call_operand.vmem [shape: f32[8,4], index: 4, kind: output, shape index: {}]  }
   0x1   :  { %v19_v0 = vld [vmem:[%s446_s1 + $0x8] sm:$0xff]  ;;  %v21_v1 = vld [vmem:[%s446_s1 + $0x18] sm:$0xff]  ;;  %v18_v2 = vld [vmem:[%s446_s1] sm:$0xff]  ;;  %102 = vmatprep.mubr.f32.mxu0 %v300_v3 }
   0x2   :  { %v263_v4 = vpack.c.bf16 %v21_v1, %v19_v0  ;;  %v20_v5 = vld [vmem:[%s446_s1 + $0x10] sm:$0xff]  ;;  %v127_v6 = vld [vmem:[%s448_s3 + $0x80] sm:$0xff]  ;;  %v128_v9 = vld [vmem:[%s448_s3 + $0x88] sm:$0xff]  ;;  %v25_v57 = vshrl.u32 %v24_v56, 7 }
   0x3   :  { %v265_v7 = vpack.c.bf16 %v20_v5, %v18_v2  ;;  %v17_v8 = vld [vmem:[%s447_s0] sm:$0xff]  ;;  %v112_v11 = vld [vmem:[%s448_s3 + $0x8] sm:$0xff]  ;;  %v267_v12 = vpack.c.bf16 %v128_v9, %v127_v6  ;;  %v129_v14 = vld [vmem:[%s448_s3 + $0x90] sm:$0xff] }
   0x4   :  { %v111_v10 = vld [vmem:[%s448_s3] sm:$0xff]  ;;  %264 = vmatprep.subr.bf16.mxu0 %v263_v4  ;;  %v130_v15 = vld [vmem:[%s448_s3 + $0x98] sm:$0xff]  ;;  %v113_v16 = vld [vmem:[%s448_s3 + $0x10] sm:$0xff]  ;;  %v26_v58 = vsub.s32 0, %v25_v57  ;;  %v30_v60 = vsub.s32 1, %v25_v57 }
   0x5   :  { %v269_v13 = vpack.c.bf16 %v112_v11, %v111_v10  ;;  %266 = vmatpush1.bf16.msra.mxu0 %v265_v7  ;;  %v271_v17 = vpack.c.bf16 %v130_v15, %v129_v14  ;;  %v114_v18 = vld [vmem:[%s448_s3 + $0x18] sm:$0xff]  ;;  %v131_v19 = vld [vmem:[%s448_s3 + $0xa0] sm:$0xff]  ;;  %v132_v20 = vld [vmem:[%s448_s3 + $0xa8] sm:$0xff]  ;;  %268 = vmatprep.subr.bf16.mxu1 %v267_v12 }
   0x6   :  { %v273_v21 = vpack.c.bf16 %v114_v18, %v113_v16  ;;  %v275_v22 = vpack.c.bf16 %v132_v20, %v131_v19  ;;  %v115_v23 = vld [vmem:[%s448_s3 + $0x20] sm:$0xff]  ;;  %v116_v24 = vld [vmem:[%s448_s3 + $0x28] sm:$0xff]  ;;  %v133_v25 = vld [vmem:[%s448_s3 + $0xb0] sm:$0xff] }
   0x7   :  { %270 = vmatpush3.bf16.msra.mxu1 %v269_v13  ;;  %v134_v26 = vld [vmem:[%s448_s3 + $0xb8] sm:$0xff]  ;;  %v277_v27 = vpack.c.bf16 %v116_v24, %v115_v23  ;;  %v117_v29 = vld [vmem:[%s448_s3 + $0x30] sm:$0xff]  ;;  %v135_v31 = vld [vmem:[%s448_s3 + $0xc0] sm:$0xff] }
   0x8   :  { %226 = vmatmul.mubr.msk.f32.vlgmr.msra.gmra.mrb[0].mxu0 %vm34_vm0, %v17_v8  ;;  %272 = vmatprep.subr.bf16.mxu1 %v271_v17  ;;  %v279_v28 = vpack.c.bf16 %v134_v26, %v133_v25  ;;  %v118_v30 = vld [vmem:[%s448_s3 + $0x38] sm:$0xff]  ;;  %v136_v32 = vld [vmem:[%s448_s3 + $0xc8] sm:$0xff]  ;;  %v119_v35 = vld [vmem:[%s448_s3 + $0x40] sm:$0xff] }
   0x9   :  { %v281_v33 = vpack.c.bf16 %v118_v30, %v117_v29  ;;  %v283_v34 = vpack.c.bf16 %v136_v32, %v135_v31  ;;  %v120_v36 = vld [vmem:[%s448_s3 + $0x48] sm:$0xff]  ;;  %v137_v37 = vld [vmem:[%s448_s3 + $0xd0] sm:$0xff]  ;;  %v138_v38 = vld [vmem:[%s448_s3 + $0xd8] sm:$0xff] }
   0xa   :  { %v285_v39 = vpack.c.bf16 %v120_v36, %v119_v35  ;;  %v287_v40 = vpack.c.bf16 %v138_v38, %v137_v37  ;;  %v121_v41 = vld [vmem:[%s448_s3 + $0x50] sm:$0xff]  ;;  %v122_v42 = vld [vmem:[%s448_s3 + $0x58] sm:$0xff]  ;;  %v139_v43 = vld [vmem:[%s448_s3 + $0xe0] sm:$0xff] }
   0xb   :  { %274 = vmatpush3.bf16.msra.mxu1 %v273_v21  ;;  %v140_v44 = vld [vmem:[%s448_s3 + $0xe8] sm:$0xff]  ;;  %v289_v45 = vpack.c.bf16 %v122_v42, %v121_v41  ;;  %v123_v47 = vld [vmem:[%s448_s3 + $0x60] sm:$0xff]  ;;  %v141_v50 = vld [vmem:[%s448_s3 + $0xf0] sm:$0xff] }
   0xc   :  { %276 = vmatprep.subr.bf16.mxu1 %v275_v22  ;;  %v291_v46 = vpack.c.bf16 %v140_v44, %v139_v43  ;;  %v124_v48 = vld [vmem:[%s448_s3 + $0x68] sm:$0xff]  ;;  %v142_v51 = vld [vmem:[%s448_s3 + $0xf8] sm:$0xff]  ;;  %v125_v53 = vld [vmem:[%s448_s3 + $0x70] sm:$0xff] }
   0xd   :  { %v293_v49 = vpack.c.bf16 %v124_v48, %v123_v47  ;;  %v295_v52 = vpack.c.bf16 %v142_v51, %v141_v50  ;;  %v126_v54 = vld [vmem:[%s448_s3 + $0x78] sm:$0xff]  ;;  %v22_v59 = vld [vmem:[%s449_s2] sm:$0x3]  ;;  %v227_v6 = vld [vmem:[%s449_s2 + $0x2] ss:$0 sm:$0xff] }
   0xe   :  { %v297_v55 = vpack.c.bf16 %v126_v54, %v125_v53  ;;  %v27_v61 = vrot.slane %v22_v59, %v26_v58  ;;  %v31_v62 = vrot.slane %v22_v59, %v30_v60 }
   0xf   :  { %278 = vmatpush3.bf16.msra.mxu1 %v277_v27 }
  0x10   :  { %280 = vmatprep.subr.bf16.mxu1 %v279_v28 }
  0x13   :  { %282 = vmatpush3.bf16.msra.mxu1 %v281_v33 }
  0x14   :  { %284 = vmatprep.subr.bf16.mxu1 %v283_v34 }
  0x17   :  { %286 = vmatpush3.bf16.msra.mxu1 %v285_v39 }
  0x18   :  { %288 = vmatprep.subr.bf16.mxu1 %v287_v40 }
  0x1b   :  { %290 = vmatpush3.bf16.msra.mxu1 %v289_v45 }
  0x1c   :  { %292 = vmatprep.subr.bf16.mxu1 %v291_v46 }
  0x1f   :  { %294 = vmatpush3.bf16.msra.mxu1 %v293_v49 }
  0x20   :  { %296 = vmatprep.subr.bf16.mxu1 %v295_v52 }
  0x23   :  { %298 = vmatpush3.bf16.msra.mxu1 %v297_v55 }
  0xdb   :  { %v104_v63 = vpop.f32.mrb[0].mxu0 }
  0xdc   :  { %v105_v0 = vadd.f32 %v104_v63, %v27_v61  ;;  %v106_v1 = vpop.f32.mrb[1].mxu0 }
  0xdd   :  { %v107_v2 = vadd.f32 %v106_v1, %v31_v62 }
  0xde   :  { %v109_v4 = vmax.f32 %v105_v0, 0.0 }
  0xdf   :  { %v110_v3 = vmax.f32 %v107_v2, 0.0 }
  0xe1   :  { %214 = vmatprep.mubr.f32.mxu1 %v110_v3 }
  0xe2   :  { %215 = vmatmul.mubr.f32.vlgmr.msra.gmra.mrb[0].mxu1 %v109_v4 }
 0x1b5   :  { %v260_v5 = vpop.f32.mrb[0].mxu1 }
 0x1b6   :  { %v261_v7 = vpop.f32.mrb[1].mxu1 }
 0x1b7   :  { %v262_v8 = vadd.f32 %v261_v7, %v260_v5 }
 0x1b9   :  { %v217_v9 = vadd.f32 %v262_v8, %v227_v6 }
 0x1bb   :  { %221 = vst.msk [vmem:[%s450_s4] sm:$0xff] %vm220_vm1, %v217_v9 }

</bundles_post_ra>
